<compile_context>
chip_gen: v7x
topology: tpu7x:2x2x1
jax: 0.10.0
libtpu: 0.0.40
codegen_flags: <defaults>
</compile_context>

<pallas_src>
import functools
import numpy as np
import jax
import jax.numpy as jnp
from jax.experimental import pallas as pl
from jax.experimental.pallas import tpu as pltpu

SQRT2 = 1.4142135623730951
LRELU_SLOPE = 0.2
MIB = 1024 * 1024


def _round_up(x, m):
    return ((x + m - 1) // m) * m


def _vmem_capacity_bytes():
    try:
        return int(pltpu.get_tpu_info().vmem_capacity_bytes)
    except Exception:
        return 64 * MIB   # conservative (v7x has the smallest VMEM)


def _lrelu(x):
    return jnp.where(x >= 0.0, x, LRELU_SLOPE * x) * SQRT2


# ------------------------------------------------------------------
# Pallas kernels
# ------------------------------------------------------------------
def _mapping_kernel(z_ref, w0_ref, b0_ref, w1_ref, b1_ref, o_ref):
    # pixel-norm + FC0 + lrelu + FC1 + lrelu fused into one launch.
    z = z_ref[...]
    x = z * jax.lax.rsqrt(jnp.mean(z * z, axis=1, keepdims=True) + 1e-8)
    h = jnp.dot(x.astype(jnp.bfloat16), w0_ref[...],
                preferred_element_type=jnp.float32) + b0_ref[...]
    h = _lrelu(h)
    o = jnp.dot(h.astype(jnp.bfloat16), w1_ref[...],
                preferred_element_type=jnp.float32) + b1_ref[...]
    o_ref[...] = _lrelu(o)


def _affine_kernel(ws_ref, w_ref, b_ref, o_ref):
    # Batched style affine: one grid step per layer (stacked weights, no
    # zero block-diagonal embedding).
    o_ref[0] = jnp.dot(ws_ref[0].astype(jnp.bfloat16), w_ref[0],
                       preferred_element_type=jnp.float32) + b_ref[0]


def _wprep_kernel(*refs, demod, fuse_rgb):
    # Per-sample weight prep (grid over N only): modulate (+demodulate) the
    # conv weight in f32, emit bf16.  Optionally also modulate the narrow
    # ToRGB weight (no demod).  Runs ONCE per sample, not per HW tile.
    if fuse_rgb:
        s_ref, w_ref, rs_ref, rw_ref, wo_ref, rwo_ref = refs
    else:
        s_ref, w_ref, wo_ref = refs
    wm = w_ref[...] * s_ref[0]                                   # [Cinkk, Cpad] f32
    if demod:
        d = jax.lax.rsqrt(jnp.sum(wm * wm, axis=0, keepdims=True) + 1e-8)
        wm = wm * d
    wo_ref[0] = wm.astype(jnp.bfloat16)
    if fuse_rgb:
        rwo_ref[0] = (rw_ref[...] * rs_ref[0]).astype(jnp.bfloat16)


def _modconv_kernel(*refs, act, fuse_rgb):
    # Pure hot loop: patches @ pre-modulated weight (bf16 in, f32 acc) + bias
    # + lrelu, bf16 store.  Optional fused ToRGB 1x1 conv to its OWN narrow
    # (128-lane) output ref.
    if fuse_rgb:
        p_ref, w_ref, b_ref, rw_ref, rb_ref, o_ref, img_ref = refs
    else:
        p_ref, w_ref, b_ref, o_ref = refs
    y = jnp.dot(p_ref[0], w_ref[0],
                preferred_element_type=jnp.float32) + b_ref[...]   # [HWt, Cpad] f32
    if act == "lrelu":
        y = _lrelu(y)
    yb = y.astype(jnp.bfloat16)
    o_ref[0] = yb
    if fuse_rgb:
        img_ref[0] = jnp.dot(yb, rw_ref[0],
                             preferred_element_type=jnp.float32) + rb_ref[...]


# ------------------------------------------------------------------
# Host-side helpers (static weight prep happens once at init)
# ------------------------------------------------------------------
def prep_conv(weight, bias):
    """weight [Cout,Cin,k,k] -> matmul-ready f32 weight [Cin*k*k, Cpad] + bias."""
    cout, cin, k, _ = weight.shape
    cinkk = cin * k * k
    cpad = _round_up(cout, 128)
    w2 = weight.astype(jnp.float32).transpose(2, 3, 1, 0).reshape(cinkk, cout)
    w2 = jnp.pad(w2, ((0, 0), (0, cpad - cout)))
    b2 = jnp.pad(bias.astype(jnp.float32), (0, cpad - cout)).reshape(1, cpad)
    return dict(w=w2, b=b2, cout=cout, cin=cin, k=k, cinkk=cinkk, cpad=cpad)


def prep_rgb(rgb_w, rgb_b, gain, cpad):
    """ToRGB 1x1 weight [Cimg,Cout,1,1] -> narrow [Cpad, 128] (zero padded rows)."""
    c_img, cout = rgb_w.shape[0], rgb_w.shape[1]
    rpad = _round_up(c_img, 128)
    wr = jnp.zeros((cpad, rpad), jnp.float32)
    wr = wr.at[:cout, :c_img].set(
        rgb_w.reshape(c_img, cout).astype(jnp.float32).T * gain)
    br = jnp.zeros((rpad,), jnp.float32).at[:c_img].set(
        rgb_b.astype(jnp.float32)).reshape(1, rpad)
    return dict(w=wr, b=br, c_img=c_img, rpad=rpad)


def _im2col_nhwc(x, k):
    """[N,H,W,C] bf16 -> [N, H*W, k*k*C] patches (same padding), (kh,kw,c) order."""
    n, h, w, c = x.shape
    if k == 1:
        return x.reshape(n, h * w, c)
    pad = k // 2
    xp = jnp.pad(x, ((0, 0), (pad, pad), (pad, pad), (0, 0)))
    cols = [xp[:, dy:dy + h, dx:dx + w, :] for dy in range(k) for dx in range(k)]
    return jnp.concatenate(cols, axis=-1).reshape(n, h * w, k * k * c)
    # TODO(synk): implicit in-kernel im2col (halo-padded VMEM tile + k*k
    # accumulated K=Cin matmuls) to avoid the k*k HBM patch write+read at
    # production resolutions.


def upsample2x_nhwc(x):
    # TODO(synk): StyleGAN2-ADA uses a FIR low-pass resampling filter; nearest
    # 2x here, and at scale this should be fused into the consumer conv's
    # patch indexing instead of materializing a 4x tensor in HBM.
    return jnp.repeat(jnp.repeat(x, 2, axis=1), 2, axis=2)


def _pick_tile(hw, cinkk, cpad, rpad, fuse_rgb):
    """Pick hw_tile + vmem_limit from buffer byte math and chip VMEM capacity."""
    cap = _vmem_capacity_bytes()
    budget = int(cap * 0.35)
    # per-sample weight(s) + biases (double buffered)
    fixed = 2 * cinkk * cpad * 2 + 2 * cpad * 4
    if fuse_rgb:
        fixed += 2 * cpad * rpad * 2 + 2 * rpad * 4

    def tile_bytes(t):
        b = 2 * t * cinkk * 2        # patches (bf16, double buffered)
        b += 2 * t * cpad * 2        # main output slab (bf16, double buffered)
        if fuse_rgb:
            b += 2 * t * rpad * 4    # rgb image (f32, double buffered)
        return b

    tile = hw
    while tile > 128 and (hw % tile or fixed + tile_bytes(tile) > budget):
        tile //= 2
    while tile > 1 and hw % tile:
        tile //= 2
    tile = max(tile, 1)
    est = fixed + tile_bytes(tile)
    vmem_limit = int(min(max(2 * est, 32 * MIB), int(cap * 0.75)))
    return tile, vmem_limit


def modulated_weights(prep, styles, *, demod=True, rgb=None, rgb_styles=None):
    """Per-sample modulated (+demodulated) bf16 weights via one small kernel."""
    n = styles.shape[0]
    cinkk, cpad, k = prep["cinkk"], prep["cpad"], prep["k"]
    stylek = jnp.tile(styles.astype(jnp.float32), (1, k * k)).reshape(n, cinkk, 1)

    inputs = [stylek, prep["w"]]
    in_specs = [pl.BlockSpec((1, cinkk, 1), lambda i: (i, 0, 0)),
                pl.BlockSpec((cinkk, cpad), lambda i: (0, 0))]
    out_shape = [jax.ShapeDtypeStruct((n, cinkk, cpad), jnp.bfloat16)]
    out_specs = [pl.BlockSpec((1, cinkk, cpad), lambda i: (i, 0, 0))]

    fuse_rgb = rgb is not None
    if fuse_rgb:
        rpad = rgb["rpad"]
        rstyle = jnp.pad(rgb_styles.astype(jnp.float32),
                         ((0, 0), (0, cpad - rgb_styles.shape[1]))).reshape(n, cpad, 1)
        inputs += [rstyle, rgb["w"]]
        in_specs += [pl.BlockSpec((1, cpad, 1), lambda i: (i, 0, 0)),
                     pl.BlockSpec((cpad, rpad), lambda i: (0, 0))]
        out_shape.append(jax.ShapeDtypeStruct((n, cpad, rpad), jnp.bfloat16))
        out_specs.append(pl.BlockSpec((1, cpad, rpad), lambda i: (i, 0, 0)))

    outs = pl.pallas_call(
        functools.partial(_wprep_kernel, demod=demod, fuse_rgb=fuse_rgb),
        grid=(n,),
        out_shape=out_shape,
        in_specs=in_specs,
        out_specs=out_specs,
        compiler_params=pltpu.CompilerParams(dimension_semantics=("parallel",)),
    )(*inputs)
    if fuse_rgb:
        return outs[0], outs[1]
    return outs[0]


def modulated_conv(x_nhwc, prep, wmd, *, rgb=None, rwm=None, act="lrelu"):
    """Channels-last modulated conv using pre-modulated bf16 weights.

    x_nhwc: [N,H,W,Cin]   wmd: [N, Cin*k*k, Cpad] bf16
    returns y [N,H,W,Cout] (bf16)                       if rgb is None
            (y, img [N,H,W,Cimg] f32)                   otherwise
    """
    n, h, w_, _ = x_nhwc.shape
    cout, cpad, cinkk, k = prep["cout"], prep["cpad"], prep["cinkk"], prep["k"]
    hw = h * w_
    fuse_rgb = rgb is not None
    rpad = rgb["rpad"] if fuse_rgb else 0

    patches = _im2col_nhwc(x_nhwc.astype(jnp.bfloat16), k)     # [N, HW, Cinkk] bf16
    hw_tile, vmem_limit = _pick_tile(hw, cinkk, cpad, rpad, fuse_rgb)
    n_hw = hw // hw_tile

    inputs = [patches, wmd, prep["b"]]
    in_specs = [pl.BlockSpec((1, hw_tile, cinkk), lambda i, j: (i, j, 0)),
                pl.BlockSpec((1, cinkk, cpad), lambda i, j: (i, 0, 0)),
                pl.BlockSpec((1, cpad), lambda i, j: (0, 0))]
    out_shape = [jax.ShapeDtypeStruct((n, hw, cpad), jnp.bfloat16)]
    out_specs = [pl.BlockSpec((1, hw_tile, cpad), lambda i, j: (i, j, 0))]
    if fuse_rgb:
        inputs += [rwm, rgb["b"]]
        in_specs += [pl.BlockSpec((1, cpad, rpad), lambda i, j: (i, 0, 0)),
                     pl.BlockSpec((1, rpad), lambda i, j: (0, 0))]
        out_shape.append(jax.ShapeDtypeStruct((n, hw, rpad), jnp.float32))
        out_specs.append(pl.BlockSpec((1, hw_tile, rpad), lambda i, j: (i, j, 0)))

    outs = pl.pallas_call(
        functools.partial(_modconv_kernel, act=act, fuse_rgb=fuse_rgb),
        grid=(n, n_hw),
        out_shape=out_shape,
        in_specs=in_specs,
        out_specs=out_specs,
        compiler_params=pltpu.CompilerParams(
            dimension_semantics=("parallel", "parallel"),
            vmem_limit_bytes=vmem_limit),
    )(*inputs)

    y = outs[0][..., :cout].reshape(n, h, w_, cout)
    if fuse_rgb:
        img = outs[1][..., :rgb["c_img"]].reshape(n, h, w_, rgb["c_img"])
        return y, img
    return y


# ------------------------------------------------------------------
# Synthetic StyleGAN2-ADA generator (deterministic params, small shapes)
# ------------------------------------------------------------------
def init_generator_params(key, z_dim, w_dim, ch, img_channels):
    ks = jax.random.split(key, 16)

    def fc(k, din, dout, bias_init=0.0):
        return (jax.random.normal(k, (din, dout), jnp.float32) / np.sqrt(din),
                jnp.full((dout,), bias_init, jnp.float32))

    def cw(k, cout, cin, ksz):
        return jax.random.normal(k, (cout, cin, ksz, ksz), jnp.float32) * 0.1

    p = {}
    p["map_fc0_w"], p["map_fc0_b"] = fc(ks[0], z_dim, w_dim)
    p["map_fc1_w"], p["map_fc1_b"] = fc(ks[1], w_dim, w_dim)
    p["const"] = jax.random.normal(ks[2], (ch, 4, 4), jnp.float32)
    # 4x4 block
    p["c1_4_aff_w"], p["c1_4_aff_b"] = fc(ks[3], w_dim, ch, 1.0)
    p["c1_4_w"] = cw(ks[4], ch, ch, 3)
    p["c1_4_b"] = jnp.zeros((ch,), jnp.float32)
    p["rgb_4_aff_w"], p["rgb_4_aff_b"] = fc(ks[5], w_dim, ch, 1.0)
    p["rgb_4_w"] = cw(ks[6], img_channels, ch, 1)
    p["rgb_4_b"] = jnp.zeros((img_channels,), jnp.float32)
    # 8x8 block
    p["c0_8_aff_w"], p["c0_8_aff_b"] = fc(ks[7], w_dim, ch, 1.0)
    p["c0_8_w"] = cw(ks[8], ch, ch, 3)
    p["c0_8_b"] = jnp.zeros((ch,), jnp.float32)
    p["c1_8_aff_w"], p["c1_8_aff_b"] = fc(ks[9], w_dim, ch, 1.0)
    p["c1_8_w"] = cw(ks[10], ch, ch, 3)
    p["c1_8_b"] = jnp.zeros((ch,), jnp.float32)
    p["rgb_8_aff_w"], p["rgb_8_aff_b"] = fc(ks[11], w_dim, ch, 1.0)
    p["rgb_8_w"] = cw(ks[12], img_channels, ch, 1)
    p["rgb_8_b"] = jnp.zeros((img_channels,), jnp.float32)
    return p


class StyleGAN2ADAGenerator:
    """Minimal StyleGAN2-ADA style generator: mapping + synthesis (4x4 -> 8x8)."""

    def __init__(self, params, z_dim=32, w_dim=32, ch=32, img_channels=3):
        self.params = params
        self.z_dim = z_dim
        self.w_dim = w_dim
        self.ch = ch
        self.img_channels = img_channels
        self.num_ws = 5
        self.rgb_gain = 1.0 / np.sqrt(ch)      # ToRGB weight_gain = 1/sqrt(Cin*1*1)

        p = params
        # ---- static weight prep done ONCE at init (no per-forward pad/transpose) ----
        wpad = _round_up(w_dim, 128)
        self.wpad = wpad
        self.map_w0 = jnp.pad(p["map_fc0_w"].astype(jnp.float32),
                              ((0, 0), (0, wpad - w_dim))).astype(jnp.bfloat16)
        self.map_b0 = jnp.pad(p["map_fc0_b"].astype(jnp.float32),
                              (0, wpad - w_dim)).reshape(1, wpad)
        self.map_w1 = jnp.pad(p["map_fc1_w"].astype(jnp.float32),
                              ((0, wpad - w_dim), (0, wpad - w_dim))).astype(jnp.bfloat16)
        self.map_b1 = jnp.pad(p["map_fc1_b"].astype(jnp.float32),
                              (0, wpad - w_dim)).reshape(1, wpad)

        # style affines: stacked (one batched matmul over layers, no zero blocks)
        names = ["c1_4", "rgb_4", "c0_8", "c1_8", "rgb_8"]
        chpad = _round_up(ch, 128)
        self.chpad = chpad
        self.aff_w = jnp.stack(
            [jnp.pad(p[f"{nm}_aff_w"].astype(jnp.float32), ((0, 0), (0, chpad - ch)))
             for nm in names]).astype(jnp.bfloat16)                 # [5, w_dim, chpad]
        self.aff_b = jnp.stack(
            [jnp.pad(p[f"{nm}_aff_b"].astype(jnp.float32),
                     (0, chpad - ch)).reshape(1, chpad) for nm in names])  # [5, 1, chpad]

        # conv layers
        self.conv_c1_4 = prep_conv(p["c1_4_w"], p["c1_4_b"])
        self.rgb_4 = prep_rgb(p["rgb_4_w"], p["rgb_4_b"], self.rgb_gain,
                              self.conv_c1_4["cpad"])
        self.conv_c0_8 = prep_conv(p["c0_8_w"], p["c0_8_b"])
        self.conv_c1_8 = prep_conv(p["c1_8_w"], p["c1_8_b"])
        self.rgb_8 = prep_rgb(p["rgb_8_w"], p["rgb_8_b"], self.rgb_gain,
                              self.conv_c1_8["cpad"])
        self.const_hwc = jnp.transpose(p["const"], (1, 2, 0)).astype(jnp.bfloat16)

    # ---- mapping network: pixel-norm + 2 FC + lrelu, ONE fused kernel ----
    def mapping(self, z, c):
        # c_dim == 0 -> class label ignored (wrapper passes c=0)
        n = z.shape[0]
        out = pl.pallas_call(
            _mapping_kernel,
            out_shape=jax.ShapeDtypeStruct((n, self.wpad), jnp.float32),
        )(z.astype(jnp.float32), self.map_w0, self.map_b0, self.map_w1, self.map_b1)
        w = out[:, :self.w_dim]
        return jnp.repeat(w[:, None, :], self.num_ws, axis=1)        # [N, num_ws, w_dim]

    # ---- all 5 style affines in one batched pallas_call ----
    def _styles(self, ws):
        n = ws.shape[0]
        wsT = jnp.transpose(ws[:, :self.num_ws].astype(jnp.float32), (1, 0, 2))
        out = pl.pallas_call(
            _affine_kernel,
            grid=(self.num_ws,),
            out_shape=jax.ShapeDtypeStruct((self.num_ws, n, self.chpad), jnp.float32),
            in_specs=[pl.BlockSpec((1, n, self.w_dim), lambda l: (l, 0, 0)),
                      pl.BlockSpec((1, self.w_dim, self.chpad), lambda l: (l, 0, 0)),
                      pl.BlockSpec((1, 1, self.chpad), lambda l: (l, 0, 0))],
            out_specs=pl.BlockSpec((1, n, self.chpad), lambda l: (l, 0, 0)),
            compiler_params=pltpu.CompilerParams(dimension_semantics=("parallel",)),
        )(wsT, self.aff_w, self.aff_b)
        return out[:, :, :self.ch]                                    # [5, N, ch]

    def synthesis(self, ws):
        n = ws.shape[0]
        s = self._styles(ws)
        s_c1_4, s_rgb4, s_c0_8, s_c1_8, s_rgb8 = (s[i] for i in range(self.num_ws))

        x = jnp.broadcast_to(self.const_hwc[None], (n, 4, 4, self.ch))
        # TODO(synk): per-layer noise injection omitted (noise_mode='none').

        # --- 4x4 block: main conv (pre-modulated weight) with fused ToRGB ---
        wmd, rwm = modulated_weights(self.conv_c1_4, s_c1_4, demod=True,
                                     rgb=self.rgb_4, rgb_styles=s_rgb4)
        x, img = modulated_conv(x, self.conv_c1_4, wmd,
                                rgb=self.rgb_4, rwm=rwm, act="lrelu")

        # --- 8x8 block ---
        x = upsample2x_nhwc(x)
        wmd = modulated_weights(self.conv_c0_8, s_c0_8, demod=True)
        x = modulated_conv(x, self.conv_c0_8, wmd, act="lrelu")

        wmd, rwm = modulated_weights(self.conv_c1_8, s_c1_8, demod=True,
                                     rgb=self.rgb_8, rgb_styles=s_rgb8)
        x, rgb8 = modulated_conv(x, self.conv_c1_8, wmd,
                                 rgb=self.rgb_8, rwm=rwm, act="lrelu")

        img = upsample2x_nhwc(img) + rgb8
        # single layout conversion back to NCHW at the very end
        return jnp.transpose(img, (0, 3, 1, 2))                      # [N, 3, 8, 8]

    def __call__(self, z, c=0):
        return self.synthesis(self.mapping(z, c))


class StyleGAN2ADAWrapper:
    """JAX/Pallas port of GAN_models/gan_load.py::StyleGAN2ADAWrapper."""

    def __init__(self, g):
        self.style_gan2 = g
        self.dim_z = self.style_gan2.z_dim

    def __call__(self, input, input_is_latent=False):
        if input_is_latent:
            return self.style_gan2.synthesis(input)
        else:
            return self.style_gan2(input, c=0)


# ------------------------------------------------------------------
if __name__ == "__main__":
    key = jax.random.PRNGKey(0)
    pkey, zkey = jax.random.split(key)

    Z_DIM, W_DIM, CH, IMG_C = 32, 32, 32, 3
    params = init_generator_params(pkey, Z_DIM, W_DIM, CH, IMG_C)
    g = StyleGAN2ADAGenerator(params, z_dim=Z_DIM, w_dim=W_DIM, ch=CH,
                              img_channels=IMG_C)
    wrapper = StyleGAN2ADAWrapper(g)

    # z path (input_is_latent=False -> full generator with c=0)
    z = jax.random.normal(zkey, (2, wrapper.dim_z), jnp.float32)
    img = jax.block_until_ready(wrapper(z))
    assert img.shape == (2, IMG_C, 8, 8) and img.dtype == jnp.float32
    assert bool(jnp.all(jnp.isfinite(img)))

    # latent path (input_is_latent=True -> synthesis only)
    ws = jax.block_until_ready(g.mapping(z, 0))
    img2 = jax.block_until_ready(wrapper(ws, input_is_latent=True))
    assert img2.shape == (2, IMG_C, 8, 8)
    assert bool(jnp.all(jnp.isfinite(img2)))

    print("KERNEL_OK")
</pallas_src>

<mosaic_0001>
module attributes {stable_mosaic.version = 11 : i64} {
  func.func @_mapping_kernel(%arg0: memref<2x32xf32, #tpu.memory_space<vmem>>, %arg1: memref<32x128xbf16, #tpu.memory_space<vmem>>, %arg2: memref<1x128xf32, #tpu.memory_space<vmem>>, %arg3: memref<128x128xbf16, #tpu.memory_space<vmem>>, %arg4: memref<1x128xf32, #tpu.memory_space<vmem>>, %arg5: memref<2x128xf32, #tpu.memory_space<vmem>>) attributes {dimension_semantics = [], scalar_prefetch = 0 : i64, scratch_operands = 0 : i64, tpu.core_type = #tpu.core_type<tc>} {
    %c0 = arith.constant 0 : index
    %c0_0 = arith.constant 0 : index
    %0 = vector.load %arg0[%c0, %c0_0] : memref<2x32xf32, #tpu.memory_space<vmem>>, vector<2x32xf32>
    %1 = arith.mulf %0, %0 : vector<2x32xf32>
    %cst = arith.constant dense<0.000000e+00> : vector<2xf32>
    %2 = vector.multi_reduction <add>, %1, %cst [1] : vector<2x32xf32> to vector<2xf32>
    %3 = vector.shape_cast %2 : vector<2xf32> to vector<2x1xf32>
    %cst_1 = arith.constant 3.200000e+01 : f32
    %4 = vector.broadcast %cst_1 : f32 to vector<2x1xf32>
    %5 = arith.divf %3, %4 : vector<2x1xf32>
    %cst_2 = arith.constant 9.99999993E-9 : f32
    %6 = vector.broadcast %cst_2 : f32 to vector<2x1xf32>
    %7 = arith.addf %5, %6 : vector<2x1xf32>
    %8 = math.rsqrt %7 : vector<2x1xf32>
    %9 = vector.broadcast %8 : vector<2x1xf32> to vector<2x32xf32>
    %10 = arith.mulf %0, %9 : vector<2x32xf32>
    %11 = arith.truncf %10 : vector<2x32xf32> to vector<2x32xbf16>
    %c0_3 = arith.constant 0 : index
    %c0_4 = arith.constant 0 : index
    %12 = vector.load %arg1[%c0_3, %c0_4] : memref<32x128xbf16, #tpu.memory_space<vmem>>, vector<32x128xbf16>
    %cst_5 = arith.constant dense<0.000000e+00> : vector<2x128xf32>
    %13 = tpu.matmul %11, %12, %cst_5 {dimension_numbers = #tpu.dot_dimension_numbers<[1], [0], [0], [1], [0, 0, 1, 1], [], []>} : vector<2x32xbf16>, vector<32x128xbf16>, vector<2x128xf32> -> vector<2x128xf32>
    %c0_6 = arith.constant 0 : index
    %c0_7 = arith.constant 0 : index
    %14 = vector.load %arg2[%c0_6, %c0_7] : memref<1x128xf32, #tpu.memory_space<vmem>>, vector<1x128xf32>
    %15 = vector.broadcast %14 : vector<1x128xf32> to vector<2x128xf32>
    %16 = arith.addf %13, %15 : vector<2x128xf32>
    %cst_8 = arith.constant 0.000000e+00 : f32
    %17 = vector.broadcast %cst_8 : f32 to vector<2x128xf32>
    %18 = arith.cmpf oge, %16, %17 : vector<2x128xf32>
    %cst_9 = arith.constant 2.000000e-01 : f32
    %19 = vector.broadcast %cst_9 : f32 to vector<2x128xf32>
    %20 = arith.mulf %19, %16 : vector<2x128xf32>
    %21 = arith.select %18, %16, %20 : vector<2x128xi1>, vector<2x128xf32>
    %cst_10 = arith.constant 1.41421354 : f32
    %22 = vector.broadcast %cst_10 : f32 to vector<2x128xf32>
    %23 = arith.mulf %21, %22 : vector<2x128xf32>
    %24 = arith.truncf %23 : vector<2x128xf32> to vector<2x128xbf16>
    %c0_11 = arith.constant 0 : index
    %c0_12 = arith.constant 0 : index
    %25 = vector.load %arg3[%c0_11, %c0_12] : memref<128x128xbf16, #tpu.memory_space<vmem>>, vector<128x128xbf16>
    %cst_13 = arith.constant dense<0.000000e+00> : vector<2x128xf32>
    %26 = tpu.matmul %24, %25, %cst_13 {dimension_numbers = #tpu.dot_dimension_numbers<[1], [0], [0], [1], [0, 0, 1, 1], [], []>} : vector<2x128xbf16>, vector<128x128xbf16>, vector<2x128xf32> -> vector<2x128xf32>
    %c0_14 = arith.constant 0 : index
    %c0_15 = arith.constant 0 : index
    %27 = vector.load %arg4[%c0_14, %c0_15] : memref<1x128xf32, #tpu.memory_space<vmem>>, vector<1x128xf32>
    %28 = vector.broadcast %27 : vector<1x128xf32> to vector<2x128xf32>
    %29 = arith.addf %26, %28 : vector<2x128xf32>
    %cst_16 = arith.constant 0.000000e+00 : f32
    %30 = vector.broadcast %cst_16 : f32 to vector<2x128xf32>
    %31 = arith.cmpf oge, %29, %30 : vector<2x128xf32>
    %cst_17 = arith.constant 2.000000e-01 : f32
    %32 = vector.broadcast %cst_17 : f32 to vector<2x128xf32>
    %33 = arith.mulf %32, %29 : vector<2x128xf32>
    %34 = arith.select %31, %29, %33 : vector<2x128xi1>, vector<2x128xf32>
    %cst_18 = arith.constant 1.41421354 : f32
    %35 = vector.broadcast %cst_18 : f32 to vector<2x128xf32>
    %36 = arith.mulf %34, %35 : vector<2x128xf32>
    %c0_19 = arith.constant 0 : index
    %c0_20 = arith.constant 0 : index
    %37 = vector.load %arg5[%c0_19, %c0_20] : memref<2x128xf32, #tpu.memory_space<vmem>>, vector<2x128xf32>
    tpu.vector_store %arg5[%c0_19, %c0_20], %36 {strides = array<i32>} : memref<2x128xf32, #tpu.memory_space<vmem>>, vector<2x128xf32>,
    return
  }
}

</mosaic_0001>

<bundles_post_ra>
// kernel: tpu_custom_call.1
= control target key start
LH: loop header
LB: loop body
LE: loop exit
PB: predicated region body
PF: predicated region fallthrough
CT: control target
= control target key end

     0   :  { %10 = vsyncpa [#allocation3], 0  ;;  %s542_s0 = inlined_call_operand.hbm [shape: f32[2,32], index: 0, kind: input, shape index: {}]   ;;  %s543_s1 = inlined_call_operand.hbm [shape: bf16[32,128], index: 1, kind: input, shape index: {}]   ;;  %s544_s2 = inlined_call_operand.vmem [shape: f32[1,128], index: 2, kind: input, shape index: {}]   ;;  %s545_s3 = inlined_call_operand.hbm [shape: bf16[128,128], index: 3, kind: input, shape index: {}]   ;;  %s546_s4 = inlined_call_operand.vmem [shape: f32[1,128], index: 4, kind: input, shape index: {}]   ;;  %s547_s5 = inlined_call_operand.hbm [shape: f32[2,128], index: 5, kind: output, shape index: {}]  }
   0x1   :  { %11 = vsyncpa [#allocation6], 0 }
   0x2   :  { %12 = vsyncpa [#allocation4], 0  ;;  %s444_s18 = smov [#allocation5]   ;;  %s350_s22 = scalar_lea.hbm %s543_s1, 256 }
   0x3   :  { %s28_s19 = sshll.u32 %s444_s18, 4  ;;  %p351_p0 = scmp.ne.s32.totalorder %s543_s1, %s350_s22  ;;  %s29_s19 = int_to_ptr.vmem [resolvable:$true] %s28_s19 }
   0x4   :  { %p354_p1 = scmp.lt.u32.totalorder %s350_s22, %s543_s1 }
   0x6   :  { %p356_p2 = pnand %p354_p1, %p351_p0 }
   0x8   :  { %359 = shalt.err (!%p356_p2)
}
   0x9   :  { %s360_s27 = scalar_lea.vmem %s29_s19, 256  ;;  %p365_p4 = scmp.lt.s32.totalorder %s29_s19, %s29_s19 }
   0xa   :  { %p361_p3 = scmp.ne.s32.totalorder %s29_s19, %s360_s27  ;;  %p366_p5 = scmp.lt.s32.totalorder %s360_s27, %s360_s27 }
   0xc   :  { %p367_p6 = por %p366_p5, %p365_p4 }
   0xe   :  { %p368_p7 = pnand %p367_p6, %p361_p3 }
  0x10   :  { %371 = shalt.err (!%p368_p7)
}
  0x11   :  { %s445_s28 = smov 64   ;;  %s446_s29 = smov 4  }
  0x12   :  { %34 = dma.hbm_to_vmem [thread:$0]  %s543_s1, 256, %s29_s19, [#allocation6], %s445_s28, %s445_s28, %s446_s29  }
  0x13   :  { %s447_s7 = smov [#allocation2]   ;;  %s448_s9 = smov [#allocation7]  }
  0x14   :  { %s19_s8 = sshll.u32 %s447_s7, 4  ;;  %s42_s10 = sshll.u32 %s448_s9, 4  ;;  %s20_s8 = int_to_ptr.vmem [resolvable:$true] %s19_s8  ;;  %s43_s10 = int_to_ptr.vmem [resolvable:$true] %s42_s10 }
  0x15   :  { %s372_s13 = scalar_lea.hbm %s542_s0, 32 }
  0x16   :  { %p373_p8 = scmp.ne.s32.totalorder %s542_s0, %s372_s13  ;;  %p376_p9 = scmp.lt.u32.totalorder %s372_s13, %s542_s0 }
  0x18   :  { %p378_p10 = pnand %p376_p9, %p373_p8 }
  0x1a   :  { %381 = shalt.err (!%p378_p10)
}
  0x1b   :  { %s382_s1 = scalar_lea.vmem %s20_s8, 32  ;;  %p387_p12 = scmp.lt.s32.totalorder %s20_s8, %s20_s8 }
  0x1c   :  { %p383_p11 = scmp.ne.s32.totalorder %s20_s8, %s382_s1  ;;  %p388_p13 = scmp.lt.s32.totalorder %s382_s1, %s382_s1 }
  0x1e   :  { %p389_p0 = por %p388_p13, %p387_p12 }
  0x20   :  { %p390_p1 = pnand %p389_p0, %p383_p11 }
  0x22   :  { %393 = shalt.err (!%p390_p1)
}
  0x23   :  { %22 = dma.hbm_to_vmem [thread:$0]  %s542_s0, 32, %s20_s8, [#allocation3]  }
  0x24   :  { %s394_s22 = scalar_lea.hbm %s545_s3, 1024 }
  0x25   :  { %p395_p2 = scmp.ne.s32.totalorder %s545_s3, %s394_s22  ;;  %p398_p3 = scmp.lt.u32.totalorder %s394_s22, %s545_s3 }
  0x27   :  { %p400_p4 = pnand %p398_p3, %p395_p2 }
  0x29   :  { %403 = shalt.err (!%p400_p4)
}
  0x2a   :  { %s404_s27 = scalar_lea.vmem %s43_s10, 1024  ;;  %p409_p6 = scmp.lt.s32.totalorder %s43_s10, %s43_s10 }
  0x2b   :  { %p405_p5 = scmp.ne.s32.totalorder %s43_s10, %s404_s27  ;;  %p410_p7 = scmp.lt.s32.totalorder %s404_s27, %s404_s27 }
  0x2d   :  { %p411_p8 = por %p410_p7, %p409_p6 }
  0x2f   :  { %p412_p9 = pnand %p411_p8, %p405_p5 }
  0x31   :  { %415 = shalt.err (!%p412_p9)
}
  0x32   :  { %48 = dma.hbm_to_vmem [thread:$0]  %s545_s3, 1024, %s43_s10, [#allocation6], %s445_s28, %s445_s28, %s446_s29  }
  0x33   :  { %438 = dma.done.wait [#allocation3], 32  }
  0x34   :  { %439 = vsyncadd [#allocation3], 4294967264 }
  0x35   :  { %440 = dma.done.wait [#allocation6], 1280  }
  0x36   :  { %441 = vsyncadd [#allocation6], 4294966016  ;;  %vm63_vm0 = vcmask 254976   ;;  %v61_v0 = vld [vmem:[#allocation2] sm:$0x3]  ;;  %v338_v3 = vld [vmem:[#allocation5] sm:$0xff]  }
  0x37   :  { %v62_v1 = vmul.f32 %v61_v0, %v61_v0  ;;  %v449_v4 = vmov 0.0   ;;  %vm450_vm1 = vmmov 0   ;;  %v339_v5 = vld [vmem:[#allocation5 + $0x8] sm:$0xff]   ;;  %v340_v6 = vld [vmem:[#allocation7] sm:$0xff]   ;;  %v341_v7 = vld [vmem:[#allocation7 + $0x8] sm:$0xff]   ;;  %vm96_vm2 = vcmask 261120  }
  0x38   :  { %302 = vmatprep.subr.bf16.mxu0 %v449_v4  ;;  %306 = vmatprep.mubr.msk.bf16.mxu0 %vm450_vm1, %v449_v4  ;;  %v342_v8 = vld [vmem:[#allocation7 + $0x10] sm:$0xff]   ;;  %v343_v9 = vld [vmem:[#allocation7 + $0x18] sm:$0xff]   ;;  %v344_v10 = vld [vmem:[#allocation7 + $0x20] sm:$0xff]  }
  0x39   :  { %v64_v2 = vsel %vm63_vm0, %v62_v1, 0.0  ;;  %303 = vmatpush3.bf16.msra.mxu0 %v338_v3  ;;  %310 = vmatprep.subr.bf16.mxu1 %v449_v4  ;;  %v345_v11 = vld [vmem:[#allocation7 + $0x28] sm:$0xff]   ;;  %v346_v18 = vld [vmem:[#allocation7 + $0x30] sm:$0xff]   ;;  %v347_v19 = vld [vmem:[#allocation7 + $0x38] sm:$0xff]  }
  0x3a   :  { %65 = vadd.xlane.f32.xlu0 %v64_v2  ;;  %304 = vmatprep.subr.bf16.mxu0 %v449_v4  ;;  %v277_v20 = vld [vmem:[%s544_s2] ss:$0 sm:$0xff]  ;;  %s451_s2 = smov [#allocation8]  }
  0x3b   :  { %326 = vmatprep.mubr.msk.bf16.mxu1 %vm450_vm1, %v449_v4  ;;  %311 = vmatpush3.bf16.msra.mxu1 %v340_v6  ;;  %v281_v30 = vld [vmem:[%s546_s4] ss:$0 sm:$0xff]  ;;  %s267_s7 = sshll.u32 %s451_s2, 4  ;;  %s268_s7 = int_to_ptr.vmem [resolvable:$true] %s267_s7 }
  0x3c   :  { %312 = vmatprep.subr.bf16.mxu1 %v449_v4  ;;  %s416_s8 = scalar_lea.vmem %s268_s7, 32  ;;  %p421_p11 = scmp.lt.s32.totalorder %s268_s7, %s268_s7 }
  0x3d   :  { %305 = vmatpush3.bf16.msra.mxu0 %v339_v5  ;;  %p417_p10 = scmp.ne.s32.totalorder %s268_s7, %s416_s8  ;;  %p422_p12 = scmp.lt.s32.totalorder %s416_s8, %s416_s8 }
  0x3f   :  { %313 = vmatpush3.bf16.msra.mxu1 %v341_v7  ;;  %p423_p13 = por %p422_p12, %p421_p11 }
  0x40   :  { %314 = vmatprep.subr.bf16.mxu1 %v449_v4 }
  0x41   :  { %p424_p0 = pnand %p423_p13, %p417_p10 }
  0x43   :  { %315 = vmatpush3.bf16.msra.mxu1 %v342_v8 }
  0x44   :  { %316 = vmatprep.subr.bf16.mxu1 %v449_v4 }
  0x47   :  { %317 = vmatpush3.bf16.msra.mxu1 %v343_v9 }
  0x48   :  { %318 = vmatprep.subr.bf16.mxu1 %v449_v4 }
  0x4b   :  { %319 = vmatpush3.bf16.msra.mxu1 %v344_v10 }
  0x4c   :  { %320 = vmatprep.subr.bf16.mxu1 %v449_v4 }
  0x4f   :  { %321 = vmatpush3.bf16.msra.mxu1 %v345_v11 }
  0x50   :  { %322 = vmatprep.subr.bf16.mxu1 %v449_v4 }
  0x53   :  { %323 = vmatpush3.bf16.msra.mxu1 %v346_v18 }
  0x54   :  { %324 = vmatprep.subr.bf16.mxu1 %v449_v4 }
  0x57   :  { %325 = vmatpush3.bf16.msra.mxu1 %v347_v19 }
  0xc7   :  { %v66_v12 = vpop.xlane.xlu0 %65 }
  0xc8   :  { %v68_v13 = vmul.f32 0.03125, %v66_v12 }
  0xca   :  { %v69_v14 = vadd.f32 1e-08, %v68_v13 }
  0xcc   :  { %348 = vrsqrt.f32 %v69_v14 }
  0xd6   :  { %v349_v15 = vpop.eup %348 }
  0xd7   :  { %v71_v16 = vmul.f32 %v349_v15, %v61_v0 }
  0xd9   :  { %v72_v17 = vpack.c.bf16 %v71_v16, %v71_v16 }
  0xdb   :  { %307 = vmatmul.mubr.msk.bf16.vlgmr.msra.gmra.mrb[0].mxu0 %vm96_vm2, %v72_v17 }
 0x1ae   :  { %v134_v21 = vpop.f32.mrb[0].mxu0 }
 0x1af   :  { %v135_v22 = vadd.f32 %v277_v20, %v134_v21  ;;  %v308_v23 = vpop.f32.mrb[1].mxu0 }
 0x1b0   :  { %v137_v24 = vpop.f32.mrb[2].mxu0 }
 0x1b1   :  { %vm140_vm3 = vcmp.ge.f32.partialorder %v135_v22, 0.0  ;;  %v141_v25 = vmul.f32 0.2, %v135_v22  ;;  %v309_v26 = vpop.f32.mrb[3].mxu0 }
 0x1b3   :  { %v142_v27 = vsel %vm140_vm3, %v135_v22, %v141_v25 }
 0x1b4   :  { %v143_v28 = vmul.f32 1.4142135, %v142_v27 }
 0x1b6   :  { %v144_v29 = vpack.c.bf16 %v143_v28, %v143_v28 }
 0x1b8   :  { %327 = vmatmul.mubr.bf16.vlgmr.msra.gmra.mrb[0].mxu1 %v144_v29 }
 0x28b   :  { %v250_v31 = vpop.f32.mrb[0].mxu1 }
 0x28c   :  { %v251_v32 = vadd.f32 %v281_v30, %v250_v31  ;;  %v328_v33 = vpop.f32.mrb[1].mxu1 }
 0x28d   :  { %v253_v34 = vpop.f32.mrb[2].mxu1 }
 0x28e   :  { %vm256_vm4 = vcmp.ge.f32.partialorder %v251_v32, 0.0  ;;  %v257_v35 = vmul.f32 0.2, %v251_v32  ;;  %v329_v36 = vpop.f32.mrb[3].mxu1 }
 0x290   :  { %v258_v37 = vsel %vm256_vm4, %v251_v32, %v257_v35 }
 0x291   :  { %v259_v38 = vmul.f32 1.4142135, %v258_v37 }
 0x293   :  { %260 = vst [vmem:[#allocation8] sm:$0x3] %v259_v38 }
 0x294   :  { %427 = shalt.err (!%p424_p0)
}
 0x295   :  { %s428_s10 = scalar_lea.hbm %s547_s5, 32 }
 0x296   :  { %p429_p1 = scmp.ne.s32.totalorder %s547_s5, %s428_s10  ;;  %p432_p2 = scmp.lt.u32.totalorder %s428_s10, %s547_s5 }
 0x298   :  { %p434_p3 = pnand %p432_p2, %p429_p1 }
 0x29a   :  { %437 = shalt.err (!%p434_p3)
}
 0x29b   :  { %270 = dma.vmem_to_hbm [thread:$0]  %s268_s7, 32, %s547_s5, [#allocation4]  }
 0x29c   :  { %442 = dma.done.wait [#allocation4], 32  }
 0x29d   :  { %443 = vsyncadd [#allocation4], 4294967264 }
 0x29e   :  { %274 = vsyncpa [#allocation3], 1 }
 0x29f   :  { %275 = vsyncpa [#allocation6], 1 }
 0x2a0   :  { %276 = vsyncpa [#allocation4], 1 }

</bundles_post_ra>
